<compile_context>
chip_gen: v6e
topology: v6e:2x2x1
jax: 0.10.0
libtpu: 0.0.40
codegen_flags: <defaults>
</compile_context>

<pallas_src>
import jax
import jax.numpy as jnp
from jax.experimental import pallas as pl
from jax.experimental.pallas import tpu as pltpu


def _round_up(n, m):
    return ((n + m - 1) // m) * m


def mlp_kernel(x_ref, w1_ref, b1_ref, w2_ref, b2_ref, o_ref):
    # x_ref:  (TILE_B, 64)  VMEM (streamed per grid step)
    # w1_ref: (64, 32)      VMEM (resident)
    # b1_ref: (1, 32)       VMEM (resident)
    # w2_ref: (1, 32)       VMEM (resident)  -- PyTorch fc2.weight layout
    # b2_ref: (1, 1)        SMEM scalar
    # o_ref:  (TILE_B, 1)   VMEM
    x = x_ref[...]

    # fc1 + ReLU: MXU matmul with f32 accumulation.
    h = jnp.dot(x, w1_ref[...], preferred_element_type=jnp.float32)
    h = jnp.maximum(h + b1_ref[...], 0.0)                  # (TILE_B, 32)

    # fc2 (out_features == 1): VPU multiply + XLU lane reduction instead of
    # wasting the 128/256-wide MXU on an N=1 matmul.
    z = jnp.sum(h * w2_ref[...], axis=-1, keepdims=True) + b2_ref[0, 0]

    # TODO(synk): output stays a (TILE_B, 1) column (masked vst); a lane-dense
    # (1, TILE_B) store would need an in-kernel sublane->lane relayout and the
    # output volume here is tiny (4 B/row vs 256 B/row of input).
    o_ref[...] = jax.nn.sigmoid(z).astype(o_ref.dtype)


def net_forward(x, w1, b1, w2, b2, *, tile_b=4096):
    """Forward pass of Net. x: (B, 64) f32 -> (B, 1) f32."""
    B, f_in = x.shape
    assert f_in == 64, "Net expects 64 input features"

    # Tile the batch: multiple of 8 (sublane rule), capped at the (rounded) batch.
    tile_b = _round_up(min(tile_b, _round_up(B, 8)), 8)
    b_pad = _round_up(B, tile_b)
    if b_pad != B:
        x = jnp.pad(x, ((0, b_pad - B), (0, 0)))
    num_tiles = b_pad // tile_b

    cost = pl.CostEstimate(
        flops=2 * b_pad * 64 * 32 + 2 * b_pad * 32,
        transcendentals=b_pad,                      # sigmoid
        bytes_accessed=b_pad * 64 * 4 + b_pad * 4 + (64 * 32 + 32 + 32 + 1) * 4,
    )

    out = pl.pallas_call(
        mlp_kernel,
        out_shape=jax.ShapeDtypeStruct((b_pad, 1), jnp.float32),
        grid=(num_tiles,),
        in_specs=[
            pl.BlockSpec((tile_b, 64), lambda i: (i, 0)),   # x: streamed tiles
            pl.BlockSpec((64, 32), lambda i: (0, 0)),       # w1: VMEM-resident
            pl.BlockSpec((1, 32), lambda i: (0, 0)),        # b1: VMEM-resident
            pl.BlockSpec((1, 32), lambda i: (0, 0)),        # w2 row: resident
            pl.BlockSpec(memory_space=pltpu.SMEM),          # b2: SMEM scalar
        ],
        out_specs=pl.BlockSpec((tile_b, 1), lambda i: (i, 0)),
        compiler_params=pltpu.CompilerParams(
            dimension_semantics=("parallel",),              # megacore on v7x
        ),
        cost_estimate=cost,
    )(x, w1, b1, w2, b2)

    return out[:B]


def init_params(key):
    # Deterministic init mimicking nn.Linear's U(-1/sqrt(in), 1/sqrt(in)).
    k1, k2, k3, k4 = jax.random.split(key, 4)
    bound1 = 1.0 / jnp.sqrt(64.0)
    bound2 = 1.0 / jnp.sqrt(32.0)
    w1 = jax.random.uniform(k1, (64, 32), jnp.float32, -bound1, bound1)
    b1 = jax.random.uniform(k2, (1, 32), jnp.float32, -bound1, bound1)
    w2 = jax.random.uniform(k3, (1, 32), jnp.float32, -bound2, bound2)  # (out, in)
    b2 = jax.random.uniform(k4, (1, 1), jnp.float32, -bound2, bound2)
    return w1, b1, w2, b2


if __name__ == "__main__":
    key = jax.random.PRNGKey(0)
    kx, kx2, kp = jax.random.split(key, 3)

    w1, b1, w2, b2 = init_params(kp)

    def ref_forward(xin):
        h = jnp.maximum(xin @ w1 + b1, 0.0)
        return jax.nn.sigmoid(h @ w2.T + b2)

    # Small batch (single tile).
    B = 8
    x = jax.random.normal(kx, (B, 64), jnp.float32)
    out = jax.block_until_ready(net_forward(x, w1, b1, w2, b2))
    assert out.shape == (B, 1)
    assert jnp.allclose(out, ref_forward(x), atol=1e-5, rtol=1e-5)

    # Batch not divisible by the tile -> padding + multiple grid steps.
    B2 = 300
    x2 = jax.random.normal(kx2, (B2, 64), jnp.float32)
    out2 = jax.block_until_ready(net_forward(x2, w1, b1, w2, b2, tile_b=128))
    assert out2.shape == (B2, 1)
    assert jnp.allclose(out2, ref_forward(x2), atol=1e-5, rtol=1e-5)

    print("KERNEL_OK")
</pallas_src>

<mosaic_0001>
module attributes {stable_mosaic.version = 11 : i64} {
  func.func @mlp_kernel(%arg0: i32, %arg1: memref<8x64xf32, #tpu.memory_space<vmem>>, %arg2: memref<64x32xf32, #tpu.memory_space<vmem>>, %arg3: memref<1x32xf32, #tpu.memory_space<vmem>>, %arg4: memref<1x32xf32, #tpu.memory_space<vmem>>, %arg5: memref<1x1xf32, #tpu.memory_space<smem>>, %arg6: memref<8x1xf32, #tpu.memory_space<vmem>>) attributes {dimension_semantics = [#tpu.dimension_semantics<parallel>], iteration_bounds = array<i64: 1>, scalar_prefetch = 0 : i64, scratch_operands = 0 : i64, tpu.core_type = #tpu.core_type<tc>, window_params = [{transform_indices = @transform_0, window_bounds = array<i64: 8, 64>}, {pipeline_mode = #tpu.pipeline_mode<synchronous>, transform_indices = @transform_1, window_bounds = array<i64: 64, 32>}, {pipeline_mode = #tpu.pipeline_mode<synchronous>, transform_indices = @transform_2, window_bounds = array<i64: 1, 32>}, {pipeline_mode = #tpu.pipeline_mode<synchronous>, transform_indices = @transform_3, window_bounds = array<i64: 1, 32>}, {transform_indices = @transform_4, window_bounds = array<i64: 1, 1>}, {transform_indices = @transform_5, window_bounds = array<i64: 8, 1>}]} {
    %c0 = arith.constant 0 : index
    %c0_0 = arith.constant 0 : index
    %0 = vector.load %arg1[%c0, %c0_0] : memref<8x64xf32, #tpu.memory_space<vmem>>, vector<8x64xf32>
    %c0_1 = arith.constant 0 : index
    %c0_2 = arith.constant 0 : index
    %1 = vector.load %arg2[%c0_1, %c0_2] : memref<64x32xf32, #tpu.memory_space<vmem>>, vector<64x32xf32>
    %cst = arith.constant dense<0.000000e+00> : vector<8x32xf32>
    %2 = tpu.matmul %0, %1, %cst {dimension_numbers = #tpu.dot_dimension_numbers<[1], [0], [0], [1], [0, 0, 1, 1], [], []>} : vector<8x64xf32>, vector<64x32xf32>, vector<8x32xf32> -> vector<8x32xf32>
    %c0_3 = arith.constant 0 : index
    %c0_4 = arith.constant 0 : index
    %3 = vector.load %arg3[%c0_3, %c0_4] : memref<1x32xf32, #tpu.memory_space<vmem>>, vector<1x32xf32>
    %4 = vector.broadcast %3 : vector<1x32xf32> to vector<8x32xf32>
    %5 = arith.addf %2, %4 : vector<8x32xf32>
    %cst_5 = arith.constant 0.000000e+00 : f32
    %6 = vector.broadcast %cst_5 : f32 to vector<8x32xf32>
    %7 = arith.maximumf %5, %6 : vector<8x32xf32>
    %c0_6 = arith.constant 0 : index
    %c0_7 = arith.constant 0 : index
    %8 = vector.load %arg4[%c0_6, %c0_7] : memref<1x32xf32, #tpu.memory_space<vmem>>, vector<1x32xf32>
    %9 = vector.broadcast %8 : vector<1x32xf32> to vector<8x32xf32>
    %10 = arith.mulf %7, %9 : vector<8x32xf32>
    %cst_8 = arith.constant dense<0.000000e+00> : vector<8xf32>
    %11 = vector.multi_reduction <add>, %10, %cst_8 [1] : vector<8x32xf32> to vector<8xf32>
    %12 = vector.shape_cast %11 : vector<8xf32> to vector<8x1xf32>
    %c0_9 = arith.constant 0 : index
    %c0_10 = arith.constant 0 : index
    %13 = memref.load %arg5[%c0_9, %c0_10] : memref<1x1xf32, #tpu.memory_space<smem>>
    %14 = vector.broadcast %13 : f32 to vector<8x1xf32>
    %15 = arith.addf %12, %14 : vector<8x1xf32>
    %16 = arith.negf %15 : vector<8x1xf32>
    %17 = math.exp %16 : vector<8x1xf32>
    %cst_11 = arith.constant 1.000000e+00 : f32
    %18 = vector.broadcast %cst_11 : f32 to vector<8x1xf32>
    %19 = arith.addf %18, %17 : vector<8x1xf32>
    %20 = arith.divf %18, %19 : vector<8x1xf32>
    %c0_12 = arith.constant 0 : index
    %c0_13 = arith.constant 0 : index
    %21 = vector.load %arg6[%c0_12, %c0_13] : memref<8x1xf32, #tpu.memory_space<vmem>>, vector<8x1xf32>
    tpu.vector_store %arg6[%c0_12, %c0_13], %20 {strides = array<i32>} : memref<8x1xf32, #tpu.memory_space<vmem>>, vector<8x1xf32>,
    return
  }
  func.func @transform_0(%arg0: i32) -> (i32, i32) {
    %c0_i32 = arith.constant 0 : i32
    %c0_i32_0 = arith.constant 0 : i32
    return %arg0, %c0_i32 : i32, i32
  }
  func.func @transform_1(%arg0: i32) -> (i32, i32) {
    %c0_i32 = arith.constant 0 : i32
    %c0_i32_0 = arith.constant 0 : i32
    %c0_i32_1 = arith.constant 0 : i32
    return %c0_i32, %c0_i32_0 : i32, i32
  }
  func.func @transform_2(%arg0: i32) -> (i32, i32) {
    %c0_i32 = arith.constant 0 : i32
    %c0_i32_0 = arith.constant 0 : i32
    %c0_i32_1 = arith.constant 0 : i32
    return %c0_i32, %c0_i32_0 : i32, i32
  }
  func.func @transform_3(%arg0: i32) -> (i32, i32) {
    %c0_i32 = arith.constant 0 : i32
    %c0_i32_0 = arith.constant 0 : i32
    %c0_i32_1 = arith.constant 0 : i32
    return %c0_i32, %c0_i32_0 : i32, i32
  }
  func.func @transform_4(%arg0: i32) -> (i32, i32) {
    %c0_i32 = arith.constant 0 : i32
    %c0_i32_0 = arith.constant 0 : i32
    %c0_i32_1 = arith.constant 0 : i32
    return %c0_i32, %c0_i32_0 : i32, i32
  }
  func.func @transform_5(%arg0: i32) -> (i32, i32) {
    %c0_i32 = arith.constant 0 : i32
    %c0_i32_0 = arith.constant 0 : i32
    return %arg0, %c0_i32 : i32, i32
  }
}

</mosaic_0001>

<bundles_post_ra>
// kernel: tpu_custom_call.1
= control target key start
LH: loop header
LB: loop body
LE: loop exit
PB: predicated region body
PF: predicated region fallthrough
CT: control target
= control target key end

     0   :  { %v177_v0 = vmov 0.0   ;;  %vm178_vm0 = vmmov 0   ;;  %vm37_vm1 = vcmask 523264   ;;  %vm120_vm2 = vcmask 261120   ;;  %s248_s1 = inlined_call_operand.vmem [shape: f32[64,32], index: 1, kind: input, shape index: {}]   ;;  %s249_s0 = inlined_call_operand.vmem [shape: f32[8,64], index: 0, kind: input, shape index: {}]   ;;  %s250_s2 = inlined_call_operand.vmem [shape: f32[1,32], index: 2, kind: input, shape index: {}]   ;;  %s251_s3 = inlined_call_operand.vmem [shape: f32[1,32], index: 3, kind: input, shape index: {}]   ;;  %s252_s4 = inlined_call_operand.<no memory space> [shape: f32[1,1], index: 4, kind: input, shape index: {}]   ;;  %s253_s5 = inlined_call_operand.vmem [shape: f32[8,1], index: 5, kind: output, shape index: {}]  }
   0x1   :  { %152 = vmatprep.subr.mxu0 %v177_v0  ;;  %v29_v1 = vld [vmem:[%s248_s1 + $0x38] sm:$0xff]  ;;  %v28_v2 = vld [vmem:[%s248_s1 + $0x30] sm:$0xff]  ;;  %168 = vmatprep.mubr.msk.f32.mxu0 %vm178_vm0, %v177_v0  ;;  %v27_v3 = vld [vmem:[%s248_s1 + $0x28] sm:$0xff]  ;;  %v125_v18 = vstv %s252_s4  ;;  %vm133_vm3 = vcmask 7168  }
   0x2   :  { %153 = vmatpush3.msra.mxu0 %v29_v1  ;;  %v26_v4 = vld [vmem:[%s248_s1 + $0x20] sm:$0xff]  ;;  %v25_v5 = vld [vmem:[%s248_s1 + $0x18] sm:$0xff]  ;;  %v24_v6 = vld [vmem:[%s248_s1 + $0x10] sm:$0xff] }
   0x3   :  { %154 = vmatprep.subr.mxu0 %v177_v0  ;;  %v23_v7 = vld [vmem:[%s248_s1 + $0x8] sm:$0xff]  ;;  %v22_v8 = vld [vmem:[%s248_s1] sm:$0xff] }
   0x4   :  { %155 = vmatpush3.msra.mxu0 %v28_v2  ;;  %v21_v9 = vld [vmem:[%s249_s0] sm:$0xff] }
   0x5   :  { %156 = vmatprep.subr.mxu0 %v177_v0  ;;  %v139_v10 = vld [vmem:[%s250_s2] ss:$0 sm:$0xff] }
   0x6   :  { %157 = vmatpush3.msra.mxu0 %v27_v3  ;;  %v141_v14 = vld [vmem:[%s251_s3] ss:$0 sm:$0xff] }
   0x7   :  { %158 = vmatprep.subr.mxu0 %v177_v0 }
   0x8   :  { %159 = vmatpush3.msra.mxu0 %v26_v4 }
   0x9   :  { %160 = vmatprep.subr.mxu0 %v177_v0 }
   0xa   :  { %161 = vmatpush3.msra.mxu0 %v25_v5 }
   0xb   :  { %162 = vmatprep.subr.mxu0 %v177_v0 }
   0xc   :  { %163 = vmatpush3.msra.mxu0 %v24_v6 }
   0xd   :  { %164 = vmatprep.subr.mxu0 %v177_v0 }
   0xe   :  { %165 = vmatpush3.msra.mxu0 %v23_v7 }
   0xf   :  { %166 = vmatprep.subr.mxu0 %v177_v0 }
  0x10   :  { %167 = vmatpush3.msra.mxu0 %v22_v8 }
  0x11   :  { %169 = vmatmul.mubr.msk.f32.vlgmr.msra.gmra.mxu0 %vm37_vm1, %v21_v9 }
  0xd1   :  { %v107_v11 = vpop.f32.mrf.mxu0 }
  0xd2   :  { %v108_v12 = vadd.f32 %v139_v10, %v107_v11 }
  0xd3   :  { %v170_v13 = vpop.f32.mrf.mxu0 }
  0xd4   :  { %v111_v15 = vmax.f32 %v108_v12, 0.0 }
  0xd6   :  { %v119_v16 = vmul.f32 %v141_v14, %v111_v15 }
  0xd8   :  { %v121_v17 = vsel %vm120_vm2, %v119_v16, 0.0 }
  0xd9   :  { %122 = vadd.xlane.f32.xlu0 %v121_v17 }
 0x162   :  { %v123_v19 = vpop.xlane.xlu0 %122 }
 0x163   :  { %v126_v20 = vadd.f32 %v125_v18, %v123_v19 }
 0x165   :  { %v142_v21 = vmul.f32 -1.442695, %v126_v20 }
 0x167   :  { %173 = vpow2.f32 %v142_v21 }
 0x174   :  { %v174_v22 = vpop.eup %173 }
 0x175   :  { %v130_v23 = vadd.f32 1.0, %v174_v22 }
 0x177   :  { %175 = vrcp.f32 %v130_v23 }
 0x184   :  { %v176_v24 = vpop.eup %175 }
 0x185   :  { %134 = vst.msk [vmem:[%s253_s5] sm:$0xff] %vm133_vm3, %v176_v24 }

</bundles_post_ra>
